<compile_context>
chip_gen: v7x
topology: tpu7x:2x2x1
jax: 0.10.0
libtpu: 0.0.40
codegen_flags: <defaults>
</compile_context>

<pallas_src>
import functools

import jax
import jax.numpy as jnp
from jax.experimental import pallas as pl
from jax.experimental.pallas import tpu as pltpu


def autoencoder_kernel(x_ref, wg_ref, bg_ref, wh_ref, bh_ref, o_ref):
    # x_ref:  [TB, Q] bf16   wg_ref: [Q, K] bf16   bg_ref: [1, K] f32
    # wh_ref: [K, Q] bf16    bh_ref: [1, Q] f32    o_ref:  [TB, Q] bf16
    x = x_ref[...]  # keep operand dtype (bf16) for the MXU

    # Encoder: sigmoid(x @ Wg + bg). MXU matmul with f32 accumulation, f32 epilogue.
    z = jnp.dot(x, wg_ref[...], preferred_element_type=jnp.float32) + bg_ref[...]
    h = jax.nn.sigmoid(z)

    # Dropout with p=0 is the identity (inference semantics); nothing to do.
    # TODO(synk): dropout p>0 / training mode would fuse pltpu.prng_seed +
    # pltpu.prng_random_bits here (and must tolerate garbage tail rows of the
    # ragged last block, which are write-masked anyway).

    # Decoder: sigmoid(h @ Wh + bh). Cast h back to the MXU operand dtype first.
    h = h.astype(wh_ref.dtype)
    y = jnp.dot(h, wh_ref[...], preferred_element_type=jnp.float32) + bh_ref[...]
    o_ref[...] = jax.nn.sigmoid(y).astype(o_ref.dtype)


def prepare_params(g_weight, g_bias, h_weight, h_bias, param_dtype=jnp.bfloat16):
    """One-time parameter transform (do NOT call per forward pass).

    PyTorch nn.Linear stores weight as [out_features, in_features]; transpose once to
    [in, out] so the kernel does plain x @ W, and cast weights to the bf16 MXU operand
    dtype.  Biases stay f32 (added to the f32 accumulator).
    """
    wg = jnp.asarray(g_weight).T.astype(param_dtype)             # [Q, K] bf16
    bg = jnp.asarray(g_bias).reshape(1, -1).astype(jnp.float32)  # [1, K] f32
    wh = jnp.asarray(h_weight).T.astype(param_dtype)             # [K, Q] bf16
    bh = jnp.asarray(h_bias).reshape(1, -1).astype(jnp.float32)  # [1, Q] f32
    return wg, bg, wh, bh


def _round_up(n, m):
    return ((n + m - 1) // m) * m


@functools.partial(jax.jit, static_argnames=("max_tile_b",))
def autoencoder_forward(x, wg, bg, wh, bh, *, max_tile_b=1024):
    """x: [B, Q] bf16; wg: [Q, K]; bg: [1, K]; wh: [K, Q]; bh: [1, Q] (from prepare_params)."""
    B, Q = x.shape
    K = wg.shape[1]

    # Static, shape-derived batch tile:
    #  * big (HBM-bound: large streaming tiles amortize grid-step overhead, better DMA),
    #  * >= 2 grid steps when possible so v7x's 2 TensorCores both get a share,
    #  * multiple of 128 rows (MXU row dim, bf16 sublane alignment).
    tile_b = max(128, min(max_tile_b, _round_up(pl.cdiv(B, 2), 128)))
    n_tiles = pl.cdiv(B, tile_b)  # last block may be ragged; Pallas masks its writeback

    itemsize = x.dtype.itemsize
    w_bytes = (Q * K + K * Q) * wg.dtype.itemsize + (K + Q) * 4

    # Explicit VMEM budget (portable across v5e 16 MiB scoped default / v7x 64 MiB phys):
    # double-buffered x + out tiles, double-buffered weights/biases, f32 z/h/y scratch.
    vmem_needed = (
        2 * 2 * tile_b * Q * itemsize      # x + out, 2-deep pipeline buffers
        + 2 * w_bytes                      # weights + biases, default double-buffer
        + tile_b * (2 * K + Q) * 4         # f32 intermediates z, h, y
    )
    vmem_limit = int(min(2 * vmem_needed + (8 << 20), 48 << 20))

    cost = pl.CostEstimate(
        flops=4 * B * Q * K,                       # two matmuls: 2 * (2*B*Q*K)
        transcendentals=2 * B * (K + Q),           # sigmoid = exp + reciprocal per elem
        bytes_accessed=(2 * B * Q * itemsize       # x in + out
                        + w_bytes),                # weights + biases
    )

    return pl.pallas_call(
        autoencoder_kernel,
        out_shape=jax.ShapeDtypeStruct((B, Q), x.dtype),
        grid_spec=pltpu.PrefetchScalarGridSpec(
            num_scalar_prefetch=0,
            grid=(n_tiles,),
            in_specs=[
                # x tile follows the batch program id (pipelined / double-buffered).
                pl.BlockSpec((tile_b, Q), lambda i: (i, 0)),
                # Weights & biases: constant index_map -> VMEM-resident, DMA'd once.
                pl.BlockSpec((Q, K), lambda i: (0, 0)),
                pl.BlockSpec((1, K), lambda i: (0, 0)),
                pl.BlockSpec((K, Q), lambda i: (0, 0)),
                pl.BlockSpec((1, Q), lambda i: (0, 0)),
            ],
            out_specs=pl.BlockSpec((tile_b, Q), lambda i: (i, 0)),
        ),
        compiler_params=pltpu.CompilerParams(
            # Batch tiles are independent -> "parallel" lets v7x shard across its 2 TCs.
            dimension_semantics=("parallel",),
            vmem_limit_bytes=vmem_limit,
        ),
        cost_estimate=cost,
    )(x, wg, bg, wh, bh)


if __name__ == "__main__":
    # Small shapes consistent with the module: num_question=Q, hidden k=K, batch of users.
    # B=200 is NOT a tile multiple -> exercises the ragged (write-masked) last block path.
    B, Q, K = 200, 256, 128

    key = jax.random.PRNGKey(0)
    kx, kgw, kgb, khw, khb = jax.random.split(key, 5)

    # Deterministic init mimicking PyTorch Linear default: U(-1/sqrt(fan_in), 1/sqrt(fan_in)).
    g_bound = 1.0 / jnp.sqrt(jnp.float32(Q))
    h_bound = 1.0 / jnp.sqrt(jnp.float32(K))
    g_weight = jax.random.uniform(kgw, (K, Q), jnp.float32, -g_bound, g_bound)  # [out, in]
    g_bias   = jax.random.uniform(kgb, (K,),   jnp.float32, -g_bound, g_bound)
    h_weight = jax.random.uniform(khw, (Q, K), jnp.float32, -h_bound, h_bound)  # [out, in]
    h_bias   = jax.random.uniform(khb, (Q,),   jnp.float32, -h_bound, h_bound)

    # One-time parameter prep (transpose + bf16 cast) — outside the forward path.
    wg, bg, wh, bh = prepare_params(g_weight, g_bias, h_weight, h_bias)

    # User vectors in [0, 1), fed to the MXU as bf16.
    x = jax.random.uniform(kx, (B, Q), jnp.float32)
    x_bf16 = x.astype(jnp.bfloat16)

    out = autoencoder_forward(x_bf16, wg, bg, wh, bh)
    out = jax.block_until_ready(out)

    # Reference in plain JAX (f32 math on the same bf16-quantized operands).
    xf = x_bf16.astype(jnp.float32)
    ref = jax.nn.sigmoid(
        jax.nn.sigmoid(xf @ wg.astype(jnp.float32) + bg) @ wh.astype(jnp.float32) + bh)

    assert out.shape == (B, Q)
    assert bool(jnp.all(jnp.isfinite(out.astype(jnp.float32))))
    assert jnp.allclose(out.astype(jnp.float32), ref, atol=2e-2, rtol=0.0), (
        float(jnp.max(jnp.abs(out.astype(jnp.float32) - ref))))

    print("KERNEL_OK")
</pallas_src>

<mosaic_0001>
module attributes {stable_mosaic.version = 11 : i64} {
  func.func @autoencoder_kernel(%arg0: i32, %arg1: memref<128x256xbf16, #tpu.memory_space<vmem>>, %arg2: memref<256x128xbf16, #tpu.memory_space<vmem>>, %arg3: memref<1x128xf32, #tpu.memory_space<vmem>>, %arg4: memref<128x256xbf16, #tpu.memory_space<vmem>>, %arg5: memref<1x256xf32, #tpu.memory_space<vmem>>, %arg6: memref<128x256xbf16, #tpu.memory_space<vmem>>) attributes {dimension_semantics = [#tpu.dimension_semantics<parallel>], iteration_bounds = array<i64: 2>, scalar_prefetch = 0 : i64, scratch_operands = 0 : i64, tpu.core_type = #tpu.core_type<tc>, window_params = [{transform_indices = @transform_0, window_bounds = array<i64: 128, 256>}, {pipeline_mode = #tpu.pipeline_mode<synchronous>, transform_indices = @transform_1, window_bounds = array<i64: 256, 128>}, {pipeline_mode = #tpu.pipeline_mode<synchronous>, transform_indices = @transform_2, window_bounds = array<i64: 1, 128>}, {pipeline_mode = #tpu.pipeline_mode<synchronous>, transform_indices = @transform_3, window_bounds = array<i64: 128, 256>}, {pipeline_mode = #tpu.pipeline_mode<synchronous>, transform_indices = @transform_4, window_bounds = array<i64: 1, 256>}, {transform_indices = @transform_5, window_bounds = array<i64: 128, 256>}]} {
    %c0 = arith.constant 0 : index
    %c0_0 = arith.constant 0 : index
    %0 = vector.load %arg1[%c0, %c0_0] : memref<128x256xbf16, #tpu.memory_space<vmem>>, vector<128x256xbf16>
    %c0_1 = arith.constant 0 : index
    %c0_2 = arith.constant 0 : index
    %1 = vector.load %arg2[%c0_1, %c0_2] : memref<256x128xbf16, #tpu.memory_space<vmem>>, vector<256x128xbf16>
    %cst = arith.constant dense<0.000000e+00> : vector<128x128xf32>
    %2 = tpu.matmul %0, %1, %cst {dimension_numbers = #tpu.dot_dimension_numbers<[1], [0], [0], [1], [0, 0, 1, 1], [], []>} : vector<128x256xbf16>, vector<256x128xbf16>, vector<128x128xf32> -> vector<128x128xf32>
    %c0_3 = arith.constant 0 : index
    %c0_4 = arith.constant 0 : index
    %3 = vector.load %arg3[%c0_3, %c0_4] : memref<1x128xf32, #tpu.memory_space<vmem>>, vector<1x128xf32>
    %4 = vector.broadcast %3 : vector<1x128xf32> to vector<128x128xf32>
    %5 = arith.addf %2, %4 : vector<128x128xf32>
    %6 = arith.negf %5 : vector<128x128xf32>
    %7 = math.exp %6 : vector<128x128xf32>
    %cst_5 = arith.constant 1.000000e+00 : f32
    %8 = vector.broadcast %cst_5 : f32 to vector<128x128xf32>
    %9 = arith.addf %8, %7 : vector<128x128xf32>
    %10 = arith.divf %8, %9 : vector<128x128xf32>
    %11 = arith.truncf %10 : vector<128x128xf32> to vector<128x128xbf16>
    %c0_6 = arith.constant 0 : index
    %c0_7 = arith.constant 0 : index
    %12 = vector.load %arg4[%c0_6, %c0_7] : memref<128x256xbf16, #tpu.memory_space<vmem>>, vector<128x256xbf16>
    %cst_8 = arith.constant dense<0.000000e+00> : vector<128x256xf32>
    %13 = tpu.matmul %11, %12, %cst_8 {dimension_numbers = #tpu.dot_dimension_numbers<[1], [0], [0], [1], [0, 0, 1, 1], [], []>} : vector<128x128xbf16>, vector<128x256xbf16>, vector<128x256xf32> -> vector<128x256xf32>
    %c0_9 = arith.constant 0 : index
    %c0_10 = arith.constant 0 : index
    %14 = vector.load %arg5[%c0_9, %c0_10] : memref<1x256xf32, #tpu.memory_space<vmem>>, vector<1x256xf32>
    %15 = vector.broadcast %14 : vector<1x256xf32> to vector<128x256xf32>
    %16 = arith.addf %13, %15 : vector<128x256xf32>
    %17 = arith.negf %16 : vector<128x256xf32>
    %18 = math.exp %17 : vector<128x256xf32>
    %cst_11 = arith.constant 1.000000e+00 : f32
    %19 = vector.broadcast %cst_11 : f32 to vector<128x256xf32>
    %20 = arith.addf %19, %18 : vector<128x256xf32>
    %21 = arith.divf %19, %20 : vector<128x256xf32>
    %22 = arith.truncf %21 : vector<128x256xf32> to vector<128x256xbf16>
    %c0_12 = arith.constant 0 : index
    %c0_13 = arith.constant 0 : index
    %23 = vector.load %arg6[%c0_12, %c0_13] : memref<128x256xbf16, #tpu.memory_space<vmem>>, vector<128x256xbf16>
    tpu.vector_store %arg6[%c0_12, %c0_13], %22 {strides = array<i32>} : memref<128x256xbf16, #tpu.memory_space<vmem>>, vector<128x256xbf16>,
    return
  }
  func.func @transform_0(%arg0: i32) -> (i32, i32) {
    %c0_i32 = arith.constant 0 : i32
    %c0_i32_0 = arith.constant 0 : i32
    return %arg0, %c0_i32 : i32, i32
  }
  func.func @transform_1(%arg0: i32) -> (i32, i32) {
    %c0_i32 = arith.constant 0 : i32
    %c0_i32_0 = arith.constant 0 : i32
    %c0_i32_1 = arith.constant 0 : i32
    return %c0_i32, %c0_i32_0 : i32, i32
  }
  func.func @transform_2(%arg0: i32) -> (i32, i32) {
    %c0_i32 = arith.constant 0 : i32
    %c0_i32_0 = arith.constant 0 : i32
    %c0_i32_1 = arith.constant 0 : i32
    return %c0_i32, %c0_i32_0 : i32, i32
  }
  func.func @transform_3(%arg0: i32) -> (i32, i32) {
    %c0_i32 = arith.constant 0 : i32
    %c0_i32_0 = arith.constant 0 : i32
    %c0_i32_1 = arith.constant 0 : i32
    return %c0_i32, %c0_i32_0 : i32, i32
  }
  func.func @transform_4(%arg0: i32) -> (i32, i32) {
    %c0_i32 = arith.constant 0 : i32
    %c0_i32_0 = arith.constant 0 : i32
    %c0_i32_1 = arith.constant 0 : i32
    return %c0_i32, %c0_i32_0 : i32, i32
  }
  func.func @transform_5(%arg0: i32) -> (i32, i32) {
    %c0_i32 = arith.constant 0 : i32
    %c0_i32_0 = arith.constant 0 : i32
    return %arg0, %c0_i32 : i32, i32
  }
}

</mosaic_0001>

<bundles_post_ra>
// kernel: autoencoder_forward.1
= control target key start
LH: loop header
LB: loop body
LE: loop exit
PB: predicated region body
PF: predicated region fallthrough
CT: control target
= control target key end

     0   :  { %10 = vsyncpa [#allocation3], 0  ;;  %s2471_s0 = inlined_call_operand.hbm [shape: bf16[200,256], index: 0, kind: input, shape index: {}]   ;;  %s2472_s1 = inlined_call_operand.hbm [shape: bf16[256,128], index: 1, kind: input, shape index: {}]   ;;  %s2473_s2 = inlined_call_operand.vmem [shape: f32[1,128], index: 2, kind: input, shape index: {}]   ;;  %s2474_s3 = inlined_call_operand.hbm [shape: bf16[128,256], index: 3, kind: input, shape index: {}]   ;;  %s2475_s4 = inlined_call_operand.vmem [shape: f32[1,256], index: 4, kind: input, shape index: {}]   ;;  %s2476_s5 = inlined_call_operand.hbm [shape: bf16[200,256], index: 5, kind: output, shape index: {}]  }
   0x1   :  { %12 = vsyncpa [#allocation3 + $0x1], 0 }
   0x2   :  { %13 = vsyncpa [#allocation6], 0 }
   0x3   :  { %14 = vsyncpa [#allocation4], 0 }
   0x4   :  { %16 = vsyncpa [#allocation4 + $0x1], 0  ;;  %s2117_s18 = smov 0   ;;  %s2119_s19 = smov 0  }
   0x5   :  { %s2121_s20 = smov 0   ;;  %s2123_s21 = smov 0  }
   0x6 LB: > { %s2138_s22 = sadd.s32 4294967295, %s2072_s21   ;;  %s1364_s23 = sadd.s32 4294967294, %s2072_s21   ;;  %s2072_s21 = sphi %s2123_s21, %s2498_s21   ;;  %s2068_s20 = sphi %s2121_s20, %s2497_s20   ;;  %s2064_s19 = sphi %s2119_s19, %s2496_s19   ;;  %s2060_s18 = sphi %s2117_s18, %s2495_s18  }
   0x7   : > { %s2142_s24 = sadd.s32 1, %s2072_s21   ;;  %s29_s25 = sadd.s32 1, %s2068_s20 }
   0x8   : > { %s26_s26 = ssub.s32 %s2072_s21, %s2142_s24  ;;  %p36_p0 = scmp.ne.s32.totalorder %s2068_s20, %s2064_s19 }
   0x9   : > { %p27_p1 = scmp.eq.s32.totalorder %s26_s26, 0  ;;  %p37_p2 = scmp.eq.s32.totalorder %s2072_s21, 0 }
   0xa   : > { %p42_p3 = scmp.ne.s32.totalorder %s2064_s19, %s2060_s18  ;;  %p2477_p4 = scmp.eq.s32.totalorder %s2138_s22, 0 }
   0xb   : > { %s2154_s27 = scalar_select %p27_p1, %s2068_s20, %s29_s25  }
   0xc   : > { %p2156_p5 = por %p37_p2, %p36_p0  ;;  %p2162_p6 = por %p2477_p4, %p42_p3 }
   0xd   : > { %2480 = sst [smem:[#allocation12_spill]] %s2154_s27  ;;  %p150_p7 = scmp.eq.s32.totalorder %s2138_s22, 1 }
   0xe   : > { %s2481_s28 = scalar_select %p2156_p5, 1, 0 }
   0xf   : > { %s2482_s29 = scalar_select %p2162_p6, 1, 0 }
  0x10   : > { %p156_p8 = scmp.eq.s32.totalorder %s1364_s23, 1  ;;  %p1365_p9 = scmp.ge.s32.totalorder %s2072_s21, 1 }
  0x11   : > { %p163_p10 = scmp.lt.s32.totalorder %s2072_s21, 3  ;;  %p2169_p11 = por %p150_p7, %p36_p0 }
  0x12   : > { %p2173_p12 = por %p156_p8, %p42_p3  ;;  %s2074_s8 = smov [#allocation5]  }
  0x13   : > { %s2483_s30 = scalar_select %p2169_p11, 1, 0 }
  0x14   : > { %s2484_s6 = scalar_select %p2173_p12, 1, 0 }
  0x15   : > { %p2177_p13 = pnand %p1365_p9, %p163_p10  ;;  %s175_s9 = sshll.u32 %s2074_s8, 4  ;;  %s176_s9 = int_to_ptr.vmem [resolvable:$true] %s175_s9 }
  0x16   : > { %s2075_s11 = smov [#allocation7]   ;;  %s1918_s15 = scalar_lea.hbm %s2472_s1, 2048 }
  0x17   : > { %s2485_s7 = scalar_select %p2177_p13, 1, 0 }
  0x18   : > { %p1603_p1 = pneg %p2177_p13  ;;  %s191_s12 = sshll.u32 %s2075_s11, 4  ;;  %s2189_s12 = int_to_ptr.vmem [resolvable:$true] %s191_s12 }
  0x19   : > { %p1919_p0 = scmp.ne.s32.totalorder %s2472_s1, %s1918_s15  ;;  %p1925_p9 = scmp.lt.u32.totalorder %s1918_s15, %s2472_s1 }
  0x1a   : > { %p2185_p2 = pnand %p1603_p1, %p2477_p4 }
  0x1c   : > { %p1920_p3 = pneg %p2185_p2 }
  0x1e   : > { %p1921_p7 = pnand %p1920_p3, %p1919_p0 }
  0x20   : > { %p1922_p8 = pneg %p1921_p7 }
  0x22   : > { %p1927_p10 = pnand %p1925_p9, %p1922_p8 }
  0x24   : > { %1930 = shalt.err (!%p1927_p10)
}
  0x25   : > { %s1931_s26 = scalar_lea.vmem %s176_s9, 2048  ;;  %p1939_p11 = scmp.lt.s32.totalorder %s176_s9, %s176_s9 }
  0x26   : > { %p1932_p1 = scmp.ne.s32.totalorder %s176_s9, %s1931_s26  ;;  %p1940_p6 = scmp.lt.s32.totalorder %s1931_s26, %s1931_s26 }
  0x28   : > { %p1934_p4 = pnand %p1932_p1, %p1920_p3  ;;  %p1941_p13 = por %p1940_p6, %p1939_p11 }
  0x2a   : > { %p1935_p12 = pneg %p1934_p4 }
  0x2c   : > { %p1942_p5 = pnand %p1941_p13, %p1935_p12 }
  0x2e   : > { %1945 = shalt.err (!%p1942_p5)
}
  0x2f   : > { %s2076_s8 = smov 64   ;;  %s2077_s11 = smov 4  }
  0x30   : > { %1606 = dma.hbm_to_vmem [thread:$0]  (!%p2185_p2), %s2472_s1, 2048, %s176_s9, [#allocation6], %s2076_s8, %s2076_s8, %s2077_s11  }
  0x31   : > { %s1946_s17 = scalar_lea.hbm %s2474_s3, 2048 }
  0x32   : > { %p1947_p4 = scmp.ne.s32.totalorder %s2474_s3, %s1946_s17  ;;  %p1953_p11 = scmp.lt.u32.totalorder %s1946_s17, %s2474_s3 }
  0x34   : > { %p1949_p5 = pnand %p1947_p4, %p1920_p3 }
  0x36   : > { %p1950_p6 = pneg %p1949_p5 }
  0x38   : > { %p1955_p12 = pnand %p1953_p11, %p1950_p6 }
  0x3a   : > { %1958 = shalt.err (!%p1955_p12)
}
  0x3b   : > { %s1959_s9 = scalar_lea.vmem %s2189_s12, 2048  ;;  %p1967_p8 = scmp.lt.s32.totalorder %s2189_s12, %s2189_s12 }
  0x3c   : > { %p1960_p13 = scmp.ne.s32.totalorder %s2189_s12, %s1959_s9  ;;  %p1968_p9 = scmp.lt.s32.totalorder %s1959_s9, %s1959_s9 }
  0x3e   : > { %p1962_p0 = pnand %p1960_p13, %p1920_p3  ;;  %p1969_p10 = por %p1968_p9, %p1967_p8 }
  0x40   : > { %p1963_p7 = pneg %p1962_p0 }
  0x42   : > { %p1970_p1 = pnand %p1969_p10, %p1963_p7 }
  0x44   : > { %1973 = shalt.err (!%p1970_p1)
}
  0x45   : > { %s2078_s27 = smov 128   ;;  %s2079_s8 = smov 8  }
  0x46   : > { %1609 = dma.hbm_to_vmem [thread:$0]  (!%p2185_p2), %s2474_s3, 2048, %s2189_s12, [#allocation6], %s2078_s27, %s2078_s27, %s2079_s8  }
  0x47   : > { %p1368_p4 = scmp.ge.s32.totalorder %s2072_s21, 2 }
  0x48   : > { %p2487_p3 = scmp.ne.s32.totalorder (!%p1368_p4), %s2481_s28, 0 }
  0x49   : > { %204 = sbr.rel (%p1368_p4) target bundleno = 115 (0x73), region = 32 }
  0x50   : > { %207 = sbr.rel (!%p2487_p3) target bundleno = 115 (0x73), region = 36  ;;  %s208_s14 = sand.u32 (%p2487_p3), 1, %s2068_s20  }
  0x51   : > { %s1370_s15 = sshll.u32 (%p2487_p3), %s2072_s21, 4  ;;  %s1369_s16 = sshll.u32 (%p2487_p3), %s208_s14, 7 }
  0x52   : > { %s214_s17 = ssub.s32 (%p2487_p3), 25, %s1370_s15  ;;  %s2248_s23 = scalar_lea.sflag (%p2487_p3), [#allocation3], %s208_s14 }
  0x53   : > { %p215_p5 = scmp.lt.s32.totalorder (%p2487_p3), %s214_s17, 16  ;;  %s212_s25 = scalar_lea.vmem (%p2487_p3), [#allocation2], %s1369_s16 }
  0x57   : > { %s2500_s17 = smov (!%p215_p5, %s214_s17), 16 }
  0x58   : > { %s2245_s10 = sshll.u32 %s2500_s17, 7 }
  0x59   : > { %s220_s12 = ssub.s32 2048, %s2245_s10 }
  0x5a   : > { %221 = vsyncadd %s2248_s23, %s220_s12  ;;  %p1373_p2 = scmp.ne.s32.totalorder %s2245_s10, 0  ;;  %s1509_s28 = sshll.u32 %s2072_s21, 11 }
  0x5b   : > { %s2256_s27 = scalar_lea.hbm %s2471_s0, %s1509_s28  ;;  %s227_s8 = sshll.u32 %s212_s25, 4  ;;  %s2258_s8 = int_to_ptr.vmem [resolvable:$true] %s227_s8 }
  0x5c   : > { %s1974_s11 = scalar_lea.hbm %s2256_s27, %s2245_s10  ;;  %s1978_s15 = scalar_lea.hbm %s2471_s0, 3200 }
  0x5d   : > { %p1975_p6 = scmp.ne.s32.totalorder %s2256_s27, %s1974_s11  ;;  %p1979_p13 = scmp.lt.u32.totalorder %s2256_s27, %s2471_s0 }
  0x5e   : > { %p1980_p0 = scmp.lt.u32.totalorder %s1978_s15, %s1974_s11  ;;  %p1982_p8 = scmp.lt.u32.totalorder %s1974_s11, %s2256_s27 }
  0x5f   : > { %p1976_p11 = pnand %p1975_p6, %p1373_p2 }
  0x60   : > { %p1981_p7 = por %p1980_p0, %p1979_p13 }
  0x61   : > { %p1977_p12 = pneg %p1976_p11 }
  0x62   : > { %p1983_p9 = por %p1982_p8, %p1981_p7 }
  0x64   : > { %p1984_p10 = pnand %p1983_p9, %p1977_p12 }
  0x66   : > { %1987 = shalt.err (!%p1984_p10)
}
  0x67   : > { %s1988_s12 = scalar_lea.vmem %s2258_s8, %s2245_s10  ;;  %s2080_s25 = smov [#allocation2]  }
  0x68   : > { %p1989_p1 = scmp.ne.s32.totalorder %s2258_s8, %s1988_s12  ;;  %s1992_s28 = sshll.u32 %s2080_s25, 4  ;;  %s1993_s28 = int_to_ptr.vmem [resolvable:$false] %s1992_s28 }
  0x69   : > { %s1994_s26 = scalar_lea.vmem %s1993_s28, 4096  ;;  %p1995_p6 = scmp.lt.s32.totalorder %s2258_s8, %s1993_s28 }
  0x6a   : > { %p1990_p3 = pnand %p1989_p1, %p1373_p2  ;;  %p1996_p11 = scmp.lt.s32.totalorder %s1994_s26, %s1988_s12 }
  0x6c   : > { %p1991_p5 = pneg %p1990_p3  ;;  %p1997_p13 = por %p1996_p11, %p1995_p6 }
  0x6e   : > { %p1998_p0 = pnand %p1997_p13, %p1991_p5 }
  0x70   : > { %2001 = shalt.err (!%p1998_p0)
}
  0x71   : > { %s2081_s9 = smov 128   ;;  %s2082_s11 = smov 8  }
  0x72   : > { %233 = dma.hbm_to_vmem [thread:$0]  (%p1373_p2), %s2256_s27, %s2245_s10, %s2258_s8, %s2248_s23, %s2081_s9, %s2081_s9, %s2082_s11  }
  0x73 PF: > { %p2488_p12 = scmp.ne.s32.totalorder %s2485_s7, 0 }
  0x74   : > { %s2288_s13 = sand.u32 (!%p2488_p12), 1, %s2064_s19   ;;  %p2489_p7 = scmp.ne.s32.totalorder (!%p2488_p12), %s2482_s29, 0 }
  0x75   : > { %239 = sbr.rel (%p2488_p12) target bundleno = 741 (0x2e5), region = 40  ;;  %s1379_s14 = sshll.u32 (!%p2488_p12), %s2288_s13, 7 }
  0x76   : > { %s242_s15 = scalar_lea.sflag (!%p2488_p12), [#allocation3], %s2288_s13  ;;  %s2294_s16 = scalar_lea.vmem (!%p2488_p12), [#allocation2], %s1379_s14 }
  0x7c   : > { %2047 = dma.done.wait (%p2489_p7), %s242_s15, 2048  }
  0x7d   : > { %2049 = vsyncadd (%p2489_p7), %s242_s15, 4294965248  ;;  %p2490_p2 = scmp.eq.s32.totalorder %s2138_s22, 0 }
  0x7f   : > { %2051 = dma.done.wait (%p2490_p2), [#allocation6], 4096   ;;  %p2491_p8 = pmov %p2490_p2 }
  0x80   : > { %v1662_v0 = vld [vmem:[#allocation5 + $0x40] sm:$0xff]   ;;  %v1664_v2 = vld [vmem:[#allocation5 + $0x48] sm:$0xff]   ;;  %v1666_v4 = vld [vmem:[#allocation5 + $0x50] sm:$0xff]   ;;  %v2083_v48 = vmov 0   ;;  %s2374_s27 = scalar_lea.vmem [#allocation8], %s1379_s14  ;;  %s1251_s8 = scalar_lea.sflag [#allocation4], %s2288_s13 }
  0x81   : > { %2053 = vsyncadd (%p2491_p8), [#allocation6], 4294963200  ;;  %v1663_v1 = vld [vmem:[#allocation5] sm:$0xff]   ;;  %1529 = vmatprep.subr.bf16.mxu0 %v1662_v0  ;;  %v1665_v3 = vld [vmem:[#allocation5 + $0x8] sm:$0xff]   ;;  %865 = vmatprep.mubr.bf16.mxu1 %v2083_v48  ;;  %p2492_p9 = scmp.ne.s32.totalorder %s2483_s30, 0 }
  0x82   : > { %1530 = vmatpush3.bf16.msra.mxu0 %v1663_v1  ;;  %v1667_v5 = vld [vmem:[#allocation5 + $0x10] sm:$0xff]   ;;  %v1668_v6 = vld [vmem:[#allocation5 + $0x58] sm:$0xff]   ;;  %v1670_v8 = vld [vmem:[#allocation5 + $0x60] sm:$0xff]   ;;  %s1497_s17 = sshll.u32 (%p2492_p9), %s2138_s22, 4 }
  0x83   : > { %1531 = vmatprep.subr.bf16.mxu0 %v1664_v2  ;;  %v1669_v7 = vld [vmem:[#allocation5 + $0x18] sm:$0xff]   ;;  %v1671_v9 = vld [vmem:[#allocation5 + $0x20] sm:$0xff]   ;;  %v1672_v10 = vld [vmem:[#allocation5 + $0x68] sm:$0xff]   ;;  %s1259_s12 = ssub.s32 (%p2492_p9), 25, %s1497_s17 }
  0x84   : > { %v1680_v11 = vld [vmem:[%s2294_s16 + $0x4] ss:$8 sps:$4 sm:$0xff]   ;;  %v1674_v13 = vld [vmem:[#allocation5 + $0x70] sm:$0xff]   ;;  %v1676_v15 = vld [vmem:[#allocation5 + $0x78] sm:$0xff]   ;;  %p1260_p10 = scmp.lt.s32.totalorder (%p2492_p9), %s1259_s12, 16 }
  0x85   : > { %v1673_v12 = vld [vmem:[#allocation5 + $0x28] sm:$0xff]   ;;  %556 = vmatprep.mubr.bf16.mxu0 %v1680_v11  ;;  %v1675_v14 = vld [vmem:[#allocation5 + $0x30] sm:$0xff]   ;;  %v1677_v16 = vld [vmem:[#allocation5 + $0x38] sm:$0xff]  }
  0x86   : > { %1532 = vmatpush3.bf16.msra.mxu0 %v1665_v3  ;;  %v1678_v17 = vld [vmem:[%s2294_s16] ss:$8 sps:$4 sm:$0xff]   ;;  %v1681_v18 = vld [vmem:[%s2294_s16 + $0x14] ss:$8 sps:$4 sm:$0xff]   ;;  %v1683_v19 = vld [vmem:[%s2294_s16 + $0x10] ss:$8 sps:$4 sm:$0xff]  }
  0x87   : > { %1533 = vmatprep.subr.bf16.mxu0 %v1666_v4  ;;  %v1684_v20 = vld [vmem:[%s2294_s16 + $0x24] ss:$8 sps:$4 sm:$0xff]   ;;  %v1686_v21 = vld [vmem:[%s2294_s16 + $0x20] ss:$8 sps:$4 sm:$0xff]   ;;  %v1687_v22 = vld [vmem:[%s2294_s16 + $0x34] ss:$8 sps:$4 sm:$0xff]  }
  0x88   : > { %v1689_v23 = vld [vmem:[%s2294_s16 + $0x30] ss:$8 sps:$4 sm:$0xff]   ;;  %v1690_v24 = vld [vmem:[%s2294_s16 + $0x44] ss:$8 sps:$4 sm:$0xff]   ;;  %v1692_v25 = vld [vmem:[%s2294_s16 + $0x40] ss:$8 sps:$4 sm:$0xff]  }
  0x89   : > { %v1693_v26 = vld [vmem:[%s2294_s16 + $0x54] ss:$8 sps:$4 sm:$0xff]   ;;  %v1695_v27 = vld [vmem:[%s2294_s16 + $0x50] ss:$8 sps:$4 sm:$0xff]   ;;  %v1696_v28 = vld [vmem:[%s2294_s16 + $0x64] ss:$8 sps:$4 sm:$0xff]  }
  0x8a   : > { %1534 = vmatpush3.bf16.msra.mxu0 %v1667_v5  ;;  %v1698_v29 = vld [vmem:[%s2294_s16 + $0x60] ss:$8 sps:$4 sm:$0xff]   ;;  %v1699_v30 = vld [vmem:[%s2294_s16 + $0x74] ss:$8 sps:$4 sm:$0xff]   ;;  %v1701_v31 = vld [vmem:[%s2294_s16 + $0x70] ss:$8 sps:$4 sm:$0xff]  }
  0x8b   : > { %1535 = vmatprep.subr.bf16.mxu0 %v1668_v6  ;;  %v1702_v32 = vld [vmem:[#allocation7 + $0x4] ss:$8 sps:$4 sm:$0xff]   ;;  %v1704_v33 = vld [vmem:[#allocation7] ss:$8 sps:$4 sm:$0xff]   ;;  %v1705_v34 = vld [vmem:[#allocation7 + $0x14] ss:$8 sps:$4 sm:$0xff]  }
  0x8c   : > { %833 = vmatprep.subr.bf16.mxu1 %v1702_v32  ;;  %v1707_v35 = vld [vmem:[#allocation7 + $0x10] ss:$8 sps:$4 sm:$0xff]   ;;  %v1708_v36 = vld [vmem:[#allocation7 + $0x24] ss:$8 sps:$4 sm:$0xff]   ;;  %v1710_v37 = vld [vmem:[#allocation7 + $0x20] ss:$8 sps:$4 sm:$0xff]  }
  0x8d   : > { %834 = vmatpush1.bf16.msra.mxu1 %v1704_v33  ;;  %v1711_v38 = vld [vmem:[#allocation7 + $0x34] ss:$8 sps:$4 sm:$0xff]   ;;  %v1713_v39 = vld [vmem:[#allocation7 + $0x30] ss:$8 sps:$4 sm:$0xff]   ;;  %v1714_v40 = vld [vmem:[#allocation7 + $0x44] ss:$8 sps:$4 sm:$0xff]  }
  0x8e   : > { %1536 = vmatpush3.bf16.msra.mxu0 %v1669_v7  ;;  %835 = vmatprep.subr.bf16.mxu1 %v1705_v34  ;;  %v1716_v41 = vld [vmem:[#allocation7 + $0x40] ss:$8 sps:$4 sm:$0xff]   ;;  %v1717_v42 = vld [vmem:[#allocation7 + $0x54] ss:$8 sps:$4 sm:$0xff]   ;;  %v1719_v43 = vld [vmem:[#allocation7 + $0x50] ss:$8 sps:$4 sm:$0xff]  }
  0x8f   : > { %1537 = vmatprep.subr.bf16.mxu0 %v1670_v8  ;;  %v1720_v44 = vld [vmem:[#allocation7 + $0x64] ss:$8 sps:$4 sm:$0xff]   ;;  %v1722_v45 = vld [vmem:[#allocation7 + $0x60] ss:$8 sps:$4 sm:$0xff]   ;;  %v1723_v46 = vld [vmem:[#allocation7 + $0x74] ss:$8 sps:$4 sm:$0xff]  }
  0x90   : > { %v1725_v47 = vld [vmem:[#allocation7 + $0x70] ss:$8 sps:$4 sm:$0xff]   ;;  %v2324_v50 = vld [vmem:[%s2473_s2] ss:$0 sm:$0xff] }
  0x91   : > { %836 = vmatpush1.bf16.msra.mxu1 %v1707_v35 }
  0x92   : > { %1538 = vmatpush3.bf16.msra.mxu0 %v1671_v9  ;;  %837 = vmatprep.subr.bf16.mxu1 %v1708_v36 }
  0x93   : > { %1539 = vmatprep.subr.bf16.mxu0 %v1672_v10 }
  0x95   : > { %838 = vmatpush1.bf16.msra.mxu1 %v1710_v37 }
  0x96   : > { %1540 = vmatpush3.bf16.msra.mxu0 %v1673_v12  ;;  %839 = vmatprep.subr.bf16.mxu1 %v1711_v38 }
  0x97   : > { %1541 = vmatprep.subr.bf16.mxu0 %v1674_v13 }
  0x99   : > { %840 = vmatpush1.bf16.msra.mxu1 %v1713_v39 }
  0x9a   : > { %1542 = vmatpush3.bf16.msra.mxu0 %v1675_v14  ;;  %841 = vmatprep.subr.bf16.mxu1 %v1714_v40 }
  0x9b   : > { %1543 = vmatprep.subr.bf16.mxu0 %v1676_v15 }
  0x9d   : > { %842 = vmatpush1.bf16.msra.mxu1 %v1716_v41 }
  0x9e   : > { %1544 = vmatpush3.bf16.msra.mxu0 %v1677_v16  ;;  %843 = vmatprep.subr.bf16.mxu1 %v1717_v42 }
  0xa1   : > { %557 = vmatmul.mubr.bf16.vlgmr.msra.gmra.mrb[0].mxu0 %v1678_v17  ;;  %844 = vmatpush1.bf16.msra.mxu1 %v1719_v43 }
  0xa2   : > { %564 = vmatprep.mubr.bf16.mxu0 %v1681_v18  ;;  %845 = vmatprep.subr.bf16.mxu1 %v1720_v44 }
  0xa5   : > { %846 = vmatpush1.bf16.msra.mxu1 %v1722_v45 }
  0xa6   : > { %847 = vmatprep.subr.bf16.mxu1 %v1723_v46 }
  0xa9   : > { %565 = vmatmul.mubr.bf16.gmra.mrb[4].mxu0 %v1683_v19  ;;  %848 = vmatpush1.bf16.msra.mxu1 %v1725_v47 }
  0xaa   : > { %572 = vmatprep.mubr.bf16.mxu0 %v1684_v20 }
  0xb1   : > { %573 = vmatmul.mubr.bf16.gmra.mrb[8].mxu0 %v1686_v21 }
  0xb2   : > { %580 = vmatprep.mubr.bf16.mxu0 %v1687_v22 }
  0xb9   : > { %581 = vmatmul.mubr.bf16.gmra.mrb[12].mxu0 %v1689_v23 }
  0xba   : > { %588 = vmatprep.mubr.bf16.mxu0 %v1690_v24 }
  0xc1   : > { %589 = vmatmul.mubr.bf16.gmra.mrb[16].mxu0 %v1692_v25 }
  0xc2   : > { %596 = vmatprep.mubr.bf16.mxu0 %v1693_v26 }
  0xc9   : > { %597 = vmatmul.mubr.bf16.gmra.mrb[20].mxu0 %v1695_v27 }
  0xca   : > { %604 = vmatprep.mubr.bf16.mxu0 %v1696_v28 }
  0xd1   : > { %605 = vmatmul.mubr.bf16.gmra.mrb[24].mxu0 %v1698_v29 }
  0xd2   : > { %612 = vmatprep.mubr.bf16.mxu0 %v1699_v30 }
  0xd9   : > { %613 = vmatmul.mubr.bf16.gmra.mrb[28].mxu0 %v1701_v31 }
 0x174   : > { %v1545_v49 = vpop.f32.mrb[0].mxu0 }
 0x175   : > { %v1546_v51 = vpop.f32.mrb[1].mxu0 }
 0x176   : > { %v1547_v52 = vadd.f32 %v1546_v51, %v1545_v49  ;;  %v1548_v53 = vpop.f32.mrb[2].mxu0 }
 0x177   : > { %v1549_v54 = vpop.f32.mrb[3].mxu0 }
 0x178   : > { %v559_v55 = vadd.f32 %v1547_v52, %v2324_v50  ;;  %v1550_v56 = vadd.f32 %v1549_v54, %v1548_v53 }
 0x17a   : > { %v1416_v57 = vmul.f32 -1.442695, %v559_v55  ;;  %v562_v58 = vadd.f32 %v1550_v56, %v2324_v50 }
 0x17c   : > { %1726 = vpow2.f32 %v1416_v57  ;;  %v1417_v59 = vmul.f32 -1.442695, %v562_v58  ;;  %v1551_v60 = vpop.f32.mrb[4].mxu0 }
 0x17d   : > { %v1552_v61 = vpop.f32.mrb[5].mxu0 }
 0x17e   : > { %1728 = vpow2.f32 %v1417_v59  ;;  %v1553_v62 = vadd.f32 %v1552_v61, %v1551_v60  ;;  %v1554_v63 = vpop.f32.mrb[6].mxu0 }
 0x17f   : > { %v1555_v0 = vpop.f32.mrb[7].mxu0 }
 0x180   : > { %v567_v1 = vadd.f32 %v1553_v62, %v2324_v50  ;;  %v1556_v2 = vadd.f32 %v1555_v0, %v1554_v63 }
 0x182   : > { %v1418_v3 = vmul.f32 -1.442695, %v567_v1  ;;  %v570_v4 = vadd.f32 %v1556_v2, %v2324_v50 }
 0x184   : > { %1730 = vpow2.f32 %v1418_v3  ;;  %v1419_v5 = vmul.f32 -1.442695, %v570_v4  ;;  %v1557_v6 = vpop.f32.mrb[8].mxu0 }
 0x185   : > { %v1558_v7 = vpop.f32.mrb[9].mxu0 }
 0x186   : > { %v1727_v8 = vpop.eup %1726  ;;  %1732 = vpow2.f32 %v1419_v5  ;;  %v1559_v9 = vadd.f32 %v1558_v7, %v1557_v6  ;;  %v1560_v10 = vpop.f32.mrb[10].mxu0 }
 0x187   : > { %v669_v11 = vadd.f32 1.0, %v1727_v8  ;;  %v1561_v12 = vpop.f32.mrb[11].mxu0 }
 0x188   : > { %v1729_v13 = vpop.eup %1728  ;;  %v575_v14 = vadd.f32 %v1559_v9, %v2324_v50  ;;  %v1562_v15 = vadd.f32 %v1561_v12, %v1560_v10 }
 0x189   : > { %v670_v16 = vadd.f32 1.0, %v1729_v13  ;;  %1734 = vrcp.f32 %v669_v11 }
 0x18a   : > { %v1420_v17 = vmul.f32 -1.442695, %v575_v14  ;;  %v578_v18 = vadd.f32 %v1562_v15, %v2324_v50 }
 0x18b   : > { %1736 = vrcp.f32 %v670_v16 }
 0x18c   : > { %1738 = vpow2.f32 %v1420_v17  ;;  %v1421_v19 = vmul.f32 -1.442695, %v578_v18  ;;  %v1563_v20 = vpop.f32.mrb[12].mxu0 }
 0x18d   : > { %v1564_v21 = vpop.f32.mrb[13].mxu0 }
 0x18e   : > { %v1731_v22 = vpop.eup %1730  ;;  %1740 = vpow2.f32 %v1421_v19  ;;  %v1565_v23 = vadd.f32 %v1564_v21, %v1563_v20  ;;  %v1566_v24 = vpop.f32.mrb[14].mxu0 }
 0x18f   : > { %v671_v25 = vadd.f32 1.0, %v1731_v22  ;;  %v1567_v26 = vpop.f32.mrb[15].mxu0 }
 0x190   : > { %v1733_v27 = vpop.eup %1732  ;;  %v583_v28 = vadd.f32 %v1565_v23, %v2324_v50  ;;  %v1568_v29 = vadd.f32 %v1567_v26, %v1566_v24 }
 0x191   : > { %v672_v30 = vadd.f32 1.0, %v1733_v27  ;;  %1742 = vrcp.f32 %v671_v25 }
 0x192   : > { %v1422_v31 = vmul.f32 -1.442695, %v583_v28  ;;  %v586_v32 = vadd.f32 %v1568_v29, %v2324_v50 }
 0x193   : > { %1744 = vrcp.f32 %v672_v30  ;;  %v1735_v33 = vpop.eup %1734 }
 0x194   : > { %1746 = vpow2.f32 %v1422_v31  ;;  %v1423_v34 = vmul.f32 -1.442695, %v586_v32  ;;  %v1569_v35 = vpop.f32.mrb[16].mxu0 }
 0x195   : > { %v1737_v36 = vpop.eup %1736  ;;  %v1570_v37 = vpop.f32.mrb[17].mxu0 }
 0x196   : > { %v1739_v38 = vpop.eup %1738  ;;  %1748 = vpow2.f32 %v1423_v34  ;;  %v1571_v39 = vadd.f32 %v1570_v37, %v1569_v35  ;;  %v1572_v40 = vpop.f32.mrb[18].mxu0  ;;  %v717_v41 = vpack.c.bf16 %v1737_v36, %v1735_v33 }
 0x197   : > { %v673_v42 = vadd.f32 1.0, %v1739_v38  ;;  %v1573_v43 = vpop.f32.mrb[19].mxu0 }
 0x198   : > { %v1741_v44 = vpop.eup %1740  ;;  %v591_v45 = vadd.f32 %v1571_v39, %v2324_v50  ;;  %v1574_v46 = vadd.f32 %v1573_v43, %v1572_v40  ;;  %866 = vmatmul.mubr.bf16.vlgmr.msra.gmra.mrb[0].mxu1 %v717_v41 }
 0x199   : > { %v674_v47 = vadd.f32 1.0, %v1741_v44  ;;  %875 = vmatprep.mubr.bf16.mxu1 %v2083_v48  ;;  %1750 = vrcp.f32 %v673_v42 }
 0x19a   : > { %v1424_v49 = vmul.f32 -1.442695, %v591_v45  ;;  %v594_v51 = vadd.f32 %v1574_v46, %v2324_v50 }
 0x19b   : > { %1752 = vrcp.f32 %v674_v47  ;;  %v1743_v52 = vpop.eup %1742 }
 0x19c   : > { %1754 = vpow2.f32 %v1424_v49  ;;  %v1425_v53 = vmul.f32 -1.442695, %v594_v51  ;;  %v1575_v54 = vpop.f32.mrb[20].mxu0 }
 0x19d   : > { %v1745_v55 = vpop.eup %1744  ;;  %v1576_v56 = vpop.f32.mrb[21].mxu0 }
 0x19e   : > { %v1747_v57 = vpop.eup %1746  ;;  %1756 = vpow2.f32 %v1425_v53  ;;  %v1577_v58 = vadd.f32 %v1576_v56, %v1575_v54  ;;  %v1578_v59 = vpop.f32.mrb[22].mxu0  ;;  %v718_v60 = vpack.c.bf16 %v1745_v55, %v1743_v52 }
 0x19f   : > { %v675_v61 = vadd.f32 1.0, %v1747_v57  ;;  %v1579_v62 = vpop.f32.mrb[23].mxu0 }
 0x1a0   : > { %v1749_v63 = vpop.eup %1748  ;;  %v599_v0 = vadd.f32 %v1577_v58, %v2324_v50  ;;  %v1580_v1 = vadd.f32 %v1579_v62, %v1578_v59  ;;  %876 = vmatmul.mubr.bf16.gmra.mrb[4].mxu1 %v718_v60 }
 0x1a1   : > { %v676_v2 = vadd.f32 1.0, %v1749_v63  ;;  %885 = vmatprep.mubr.bf16.mxu1 %v2083_v48  ;;  %1758 = vrcp.f32 %v675_v61  ;;  %v743_v61 = vlaneseq }
 0x1a2   : > { %v1426_v3 = vmul.f32 -1.442695, %v599_v0  ;;  %v602_v4 = vadd.f32 %v1580_v1, %v2324_v50  ;;  %v741_v0 = vld [vmem:[%s2475_s4] sm:$0x3] }
 0x1a3   : > { %1760 = vrcp.f32 %v676_v2  ;;  %v1751_v5 = vpop.eup %1750  ;;  %v744_v62 = vshrl.u32 %v743_v61, 7 }
 0x1a4   : > { %1762 = vpow2.f32 %v1426_v3  ;;  %v1427_v6 = vmul.f32 -1.442695, %v602_v4  ;;  %v1581_v7 = vpop.f32.mrb[24].mxu0 }
 0x1a5   : > { %v1753_v8 = vpop.eup %1752  ;;  %v1582_v9 = vpop.f32.mrb[25].mxu0  ;;  %v745_v63 = vsub.s32 0, %v744_v62  ;;  %v749_v1 = vsub.s32 1, %v744_v62 }
 0x1a6   : > { %v1755_v10 = vpop.eup %1754  ;;  %1764 = vpow2.f32 %v1427_v6  ;;  %v1583_v11 = vadd.f32 %v1582_v9, %v1581_v7  ;;  %v1584_v12 = vpop.f32.mrb[26].mxu0  ;;  %v719_v13 = vpack.c.bf16 %v1753_v8, %v1751_v5 }
 0x1a7   : > { %v677_v14 = vadd.f32 1.0, %v1755_v10  ;;  %v1585_v15 = vpop.f32.mrb[27].mxu0  ;;  %v2352_v2 = vrot.slane %v741_v0, %v745_v63  ;;  %v2354_v3 = vrot.slane %v741_v0, %v749_v1 }
 0x1a8   : > { %v1757_v16 = vpop.eup %1756  ;;  %v607_v17 = vadd.f32 %v1583_v11, %v2324_v50  ;;  %v1586_v18 = vadd.f32 %v1585_v15, %v1584_v12  ;;  %886 = vmatmul.mubr.bf16.gmra.mrb[8].mxu1 %v719_v13 }
 0x1a9   : > { %v678_v19 = vadd.f32 1.0, %v1757_v16  ;;  %895 = vmatprep.mubr.bf16.mxu1 %v2083_v48  ;;  %1766 = vrcp.f32 %v677_v14 }
 0x1aa   : > { %v1428_v20 = vmul.f32 -1.442695, %v607_v17  ;;  %v610_v21 = vadd.f32 %v1586_v18, %v2324_v50 }
 0x1ab   : > { %1768 = vrcp.f32 %v678_v19  ;;  %v1759_v22 = vpop.eup %1758 }
 0x1ac   : > { %1770 = vpow2.f32 %v1428_v20  ;;  %v1429_v23 = vmul.f32 -1.442695, %v610_v21  ;;  %v1587_v24 = vpop.f32.mrb[28].mxu0 }
 0x1ad   : > { %v1761_v25 = vpop.eup %1760  ;;  %v1588_v26 = vpop.f32.mrb[29].mxu0 }
 0x1ae   : > { %v1763_v27 = vpop.eup %1762  ;;  %1772 = vpow2.f32 %v1429_v23  ;;  %v1589_v28 = vadd.f32 %v1588_v26, %v1587_v24  ;;  %v1590_v29 = vpop.f32.mrb[30].mxu0  ;;  %v720_v30 = vpack.c.bf16 %v1761_v25, %v1759_v22 }
 0x1af   : > { %v679_v31 = vadd.f32 1.0, %v1763_v27  ;;  %v1591_v32 = vpop.f32.mrb[31].mxu0 }
 0x1b0   : > { %v1765_v33 = vpop.eup %1764  ;;  %v615_v34 = vadd.f32 %v1589_v28, %v2324_v50  ;;  %v1592_v35 = vadd.f32 %v1591_v32, %v1590_v29  ;;  %896 = vmatmul.mubr.bf16.gmra.mrb[12].mxu1 %v720_v30 }
 0x1b1   : > { %v680_v36 = vadd.f32 1.0, %v1765_v33  ;;  %905 = vmatprep.mubr.bf16.mxu1 %v2083_v48  ;;  %1774 = vrcp.f32 %v679_v31 }
 0x1b2   : > { %v1430_v37 = vmul.f32 -1.442695, %v615_v34  ;;  %v618_v38 = vadd.f32 %v1592_v35, %v2324_v50 }
 0x1b3   : > { %1776 = vrcp.f32 %v680_v36  ;;  %v1767_v39 = vpop.eup %1766 }
 0x1b4   : > { %1778 = vpow2.f32 %v1430_v37  ;;  %v1431_v40 = vmul.f32 -1.442695, %v618_v38 }
 0x1b5   : > { %v1769_v41 = vpop.eup %1768 }
 0x1b6   : > { %v1771_v42 = vpop.eup %1770  ;;  %1780 = vpow2.f32 %v1431_v40  ;;  %v721_v43 = vpack.c.bf16 %v1769_v41, %v1767_v39 }
 0x1b7   : > { %v681_v44 = vadd.f32 1.0, %v1771_v42 }
 0x1b8   : > { %v1773_v45 = vpop.eup %1772  ;;  %906 = vmatmul.mubr.bf16.gmra.mrb[16].mxu1 %v721_v43 }
 0x1b9   : > { %v682_v46 = vadd.f32 1.0, %v1773_v45  ;;  %915 = vmatprep.mubr.bf16.mxu1 %v2083_v48  ;;  %1782 = vrcp.f32 %v681_v44 }
 0x1bb   : > { %1784 = vrcp.f32 %v682_v46  ;;  %v1775_v47 = vpop.eup %1774 }
 0x1bd   : > { %v1777_v49 = vpop.eup %1776 }
 0x1be   : > { %v1779_v51 = vpop.eup %1778  ;;  %v722_v50 = vpack.c.bf16 %v1777_v49, %v1775_v47 }
 0x1bf   : > { %v683_v52 = vadd.f32 1.0, %v1779_v51 }
 0x1c0   : > { %v1781_v53 = vpop.eup %1780  ;;  %916 = vmatmul.mubr.bf16.gmra.mrb[20].mxu1 %v722_v50 }
 0x1c1   : > { %v684_v54 = vadd.f32 1.0, %v1781_v53  ;;  %925 = vmatprep.mubr.bf16.mxu1 %v2083_v48  ;;  %1786 = vrcp.f32 %v683_v52 }
 0x1c3   : > { %1788 = vrcp.f32 %v684_v54  ;;  %v1783_v55 = vpop.eup %1782 }
 0x1c5   : > { %v1785_v56 = vpop.eup %1784 }
 0x1c6   : > { %v723_v57 = vpack.c.bf16 %v1785_v56, %v1783_v55 }
 0x1c8   : > { %926 = vmatmul.mubr.bf16.gmra.mrb[24].mxu1 %v723_v57 }
 0x1c9   : > { %935 = vmatprep.mubr.bf16.mxu1 %v2083_v48 }
 0x1cb   : > { %v1787_v58 = vpop.eup %1786 }
 0x1cd   : > { %v1789_v59 = vpop.eup %1788 }
 0x1ce   : > { %v724_v60 = vpack.c.bf16 %v1789_v59, %v1787_v58 }
 0x1d0   : > { %936 = vmatmul.mubr.bf16.gmra.mrb[28].mxu1 %v724_v60 }
 0x26b   : > { %v867_v4 = vpop.f32.mrb[0].mxu1 }
 0x26c   : > { %v868_v5 = vadd.f32 %v867_v4, %v2352_v2  ;;  %v869_v48 = vpop.f32.mrb[1].mxu1 }
 0x26d   : > { %v870_v6 = vadd.f32 %v869_v48, %v2354_v3  ;;  %v871_v7 = vpop.f32.mrb[2].mxu1 }
 0x26e   : > { %v1448_v8 = vmul.f32 -1.442695, %v868_v5  ;;  %v872_v9 = vadd.f32 %v871_v7, %v2352_v2  ;;  %v873_v10 = vpop.f32.mrb[3].mxu1 }
 0x26f   : > { %v1449_v11 = vmul.f32 -1.442695, %v870_v6  ;;  %v874_v12 = vadd.f32 %v873_v10, %v2354_v3 }
 0x270   : > { %1790 = vpow2.f32 %v1448_v8  ;;  %v1450_v13 = vmul.f32 -1.442695, %v872_v9 }
 0x271   : > { %1792 = vpow2.f32 %v1449_v11  ;;  %v1451_v14 = vmul.f32 -1.442695, %v874_v12 }
 0x272   : > { %1794 = vpow2.f32 %v1450_v13 }
 0x273   : > { %1796 = vpow2.f32 %v1451_v14  ;;  %v877_v15 = vpop.f32.mrb[4].mxu1 }
 0x274   : > { %v878_v16 = vadd.f32 %v877_v15, %v2352_v2  ;;  %v879_v17 = vpop.f32.mrb[5].mxu1 }
 0x275   : > { %v880_v18 = vadd.f32 %v879_v17, %v2354_v3  ;;  %v881_v19 = vpop.f32.mrb[6].mxu1 }
 0x276   : > { %v1452_v20 = vmul.f32 -1.442695, %v878_v16  ;;  %v882_v21 = vadd.f32 %v881_v19, %v2352_v2  ;;  %v883_v22 = vpop.f32.mrb[7].mxu1 }
 0x277   : > { %v1453_v23 = vmul.f32 -1.442695, %v880_v18  ;;  %v884_v24 = vadd.f32 %v883_v22, %v2354_v3 }
 0x278   : > { %1798 = vpow2.f32 %v1452_v20  ;;  %v1454_v25 = vmul.f32 -1.442695, %v882_v21 }
 0x279   : > { %1800 = vpow2.f32 %v1453_v23  ;;  %v1455_v26 = vmul.f32 -1.442695, %v884_v24 }
 0x27a   : > { %v1791_v27 = vpop.eup %1790  ;;  %1802 = vpow2.f32 %v1454_v25 }
 0x27b   : > { %v1793_v28 = vpop.eup %1792  ;;  %v1042_v29 = vadd.f32 1.0, %v1791_v27  ;;  %1804 = vpow2.f32 %v1455_v26  ;;  %v887_v30 = vpop.f32.mrb[8].mxu1 }
 0x27c   : > { %v1795_v31 = vpop.eup %1794  ;;  %v1043_v32 = vadd.f32 1.0, %v1793_v28  ;;  %v888_v33 = vadd.f32 %v887_v30, %v2352_v2  ;;  %v889_v34 = vpop.f32.mrb[9].mxu1 }
 0x27d   : > { %v1797_v35 = vpop.eup %1796  ;;  %1806 = vrcp.f32 %v1042_v29  ;;  %v1044_v36 = vadd.f32 1.0, %v1795_v31  ;;  %v890_v37 = vadd.f32 %v889_v34, %v2354_v3  ;;  %v891_v38 = vpop.f32.mrb[10].mxu1 }
 0x27e   : > { %1808 = vrcp.f32 %v1043_v32  ;;  %v1045_v39 = vadd.f32 1.0, %v1797_v35  ;;  %v1456_v40 = vmul.f32 -1.442695, %v888_v33  ;;  %v892_v41 = vadd.f32 %v891_v38, %v2352_v2  ;;  %v893_v42 = vpop.f32.mrb[11].mxu1 }
 0x27f   : > { %1810 = vrcp.f32 %v1044_v36  ;;  %v1457_v43 = vmul.f32 -1.442695, %v890_v37  ;;  %v894_v44 = vadd.f32 %v893_v42, %v2354_v3 }
 0x280   : > { %1812 = vrcp.f32 %v1045_v39  ;;  %v1458_v45 = vmul.f32 -1.442695, %v892_v41 }
 0x281   : > { %1814 = vpow2.f32 %v1456_v40  ;;  %v1459_v46 = vmul.f32 -1.442695, %v894_v44 }
 0x282   : > { %v1799_v47 = vpop.eup %1798  ;;  %1816 = vpow2.f32 %v1457_v43 }
 0x283   : > { %v1801_v49 = vpop.eup %1800  ;;  %v1046_v51 = vadd.f32 1.0, %v1799_v47  ;;  %1818 = vpow2.f32 %v1458_v45  ;;  %v897_v50 = vpop.f32.mrb[12].mxu1 }
 0x284   : > { %v1803_v52 = vpop.eup %1802  ;;  %v1047_v53 = vadd.f32 1.0, %v1801_v49  ;;  %1820 = vpow2.f32 %v1459_v46  ;;  %v898_v54 = vadd.f32 %v897_v50, %v2352_v2  ;;  %v899_v55 = vpop.f32.mrb[13].mxu1 }
 0x285   : > { %v1805_v56 = vpop.eup %1804  ;;  %1822 = vrcp.f32 %v1046_v51  ;;  %v1048_v57 = vadd.f32 1.0, %v1803_v52  ;;  %v900_v58 = vadd.f32 %v899_v55, %v2354_v3  ;;  %v901_v59 = vpop.f32.mrb[14].mxu1 }
 0x286   : > { %1824 = vrcp.f32 %v1047_v53  ;;  %v1049_v60 = vadd.f32 1.0, %v1805_v56  ;;  %v1460_v61 = vmul.f32 -1.442695, %v898_v54  ;;  %v902_v62 = vadd.f32 %v901_v59, %v2352_v2  ;;  %v903_v63 = vpop.f32.mrb[15].mxu1 }
 0x287   : > { %v1807_v0 = vpop.eup %1806  ;;  %1826 = vrcp.f32 %v1048_v57  ;;  %v1461_v1 = vmul.f32 -1.442695, %v900_v58  ;;  %v904_v4 = vadd.f32 %v903_v63, %v2354_v3 }
 0x288   : > { %v1809_v5 = vpop.eup %1808  ;;  %1828 = vrcp.f32 %v1049_v60  ;;  %v1462_v48 = vmul.f32 -1.442695, %v902_v62 }
 0x289   : > { %v1811_v6 = vpop.eup %1810  ;;  %v1510_v7 = vpack.c.bf16 %v1809_v5, %v1807_v0  ;;  %1830 = vpow2.f32 %v1460_v61  ;;  %v1463_v8 = vmul.f32 -1.442695, %v904_v4 }
 0x28a   : > { %v1813_v9 = vpop.eup %1812  ;;  %1832 = vpow2.f32 %v1461_v1 }
 0x28b   : > { %v1815_v10 = vpop.eup %1814  ;;  %1234 = vst [vmem:[%s2374_s27] sm:$0xff] %v1510_v7  ;;  %v1511_v11 = vpack.c.bf16 %v1813_v9, %v1811_v6  ;;  %1834 = vpow2.f32 %v1462_v48  ;;  %v907_v12 = vpop.f32.mrb[16].mxu1 }
 0x28c   : > { %v1817_v13 = vpop.eup %1816  ;;  %v1050_v14 = vadd.f32 1.0, %v1815_v10  ;;  %1836 = vpow2.f32 %v1463_v8  ;;  %v908_v15 = vadd.f32 %v907_v12, %v2352_v2  ;;  %v909_v16 = vpop.f32.mrb[17].mxu1 }
 0x28d   : > { %v1819_v17 = vpop.eup %1818  ;;  %1235 = vst [vmem:[%s2374_s27 + $0x8] sm:$0xff] %v1511_v11  ;;  %v1051_v18 = vadd.f32 1.0, %v1817_v13  ;;  %v910_v19 = vadd.f32 %v909_v16, %v2354_v3  ;;  %v911_v20 = vpop.f32.mrb[18].mxu1 }
 0x28e   : > { %v1821_v21 = vpop.eup %1820  ;;  %1838 = vrcp.f32 %v1050_v14  ;;  %v1052_v22 = vadd.f32 1.0, %v1819_v17  ;;  %v1464_v23 = vmul.f32 -1.442695, %v908_v15  ;;  %v912_v24 = vadd.f32 %v911_v20, %v2352_v2  ;;  %v913_v25 = vpop.f32.mrb[19].mxu1 }
 0x28f   : > { %v1823_v26 = vpop.eup %1822  ;;  %1840 = vrcp.f32 %v1051_v18  ;;  %v1053_v27 = vadd.f32 1.0, %v1821_v21  ;;  %v1465_v28 = vmul.f32 -1.442695, %v910_v19  ;;  %v914_v29 = vadd.f32 %v913_v25, %v2354_v3 }
 0x290   : > { %v1825_v30 = vpop.eup %1824  ;;  %1842 = vrcp.f32 %v1052_v22  ;;  %v1466_v31 = vmul.f32 -1.442695, %v912_v24 }
 0x291   : > { %v1827_v32 = vpop.eup %1826  ;;  %v1512_v33 = vpack.c.bf16 %v1825_v30, %v1823_v26  ;;  %1844 = vrcp.f32 %v1053_v27  ;;  %v1467_v34 = vmul.f32 -1.442695, %v914_v29 }
 0x292   : > { %v1829_v35 = vpop.eup %1828  ;;  %1846 = vpow2.f32 %v1464_v23 }
 0x293   : > { %v1831_v36 = vpop.eup %1830  ;;  %1236 = vst [vmem:[%s2374_s27 + $0x10] sm:$0xff] %v1512_v33  ;;  %v1513_v37 = vpack.c.bf16 %v1829_v35, %v1827_v32  ;;  %1848 = vpow2.f32 %v1465_v28  ;;  %v917_v38 = vpop.f32.mrb[20].mxu1 }
 0x294   : > { %v1833_v39 = vpop.eup %1832  ;;  %v1054_v40 = vadd.f32 1.0, %v1831_v36  ;;  %1850 = vpow2.f32 %v1466_v31  ;;  %v918_v41 = vadd.f32 %v917_v38, %v2352_v2  ;;  %v919_v42 = vpop.f32.mrb[21].mxu1 }
 0x295   : > { %v1835_v43 = vpop.eup %1834  ;;  %1237 = vst [vmem:[%s2374_s27 + $0x18] sm:$0xff] %v1513_v37  ;;  %v1055_v44 = vadd.f32 1.0, %v1833_v39  ;;  %1852 = vpow2.f32 %v1467_v34  ;;  %v920_v45 = vadd.f32 %v919_v42, %v2354_v3  ;;  %v921_v46 = vpop.f32.mrb[22].mxu1 }
 0x296   : > { %v1837_v47 = vpop.eup %1836  ;;  %1854 = vrcp.f32 %v1054_v40  ;;  %v1056_v49 = vadd.f32 1.0, %v1835_v43  ;;  %v1468_v51 = vmul.f32 -1.442695, %v918_v41  ;;  %v922_v50 = vadd.f32 %v921_v46, %v2352_v2  ;;  %v923_v52 = vpop.f32.mrb[23].mxu1 }
 0x297   : > { %1856 = vrcp.f32 %v1055_v44  ;;  %v1057_v53 = vadd.f32 1.0, %v1837_v47  ;;  %v1469_v54 = vmul.f32 -1.442695, %v920_v45  ;;  %v924_v55 = vadd.f32 %v923_v52, %v2354_v3 }
 0x298   : > { %v1839_v56 = vpop.eup %1838  ;;  %1858 = vrcp.f32 %v1056_v49  ;;  %v1470_v57 = vmul.f32 -1.442695, %v922_v50 }
 0x299   : > { %v1841_v58 = vpop.eup %1840  ;;  %1860 = vrcp.f32 %v1057_v53  ;;  %v1471_v59 = vmul.f32 -1.442695, %v924_v55 }
 0x29a   : > { %v1843_v60 = vpop.eup %1842  ;;  %v1514_v61 = vpack.c.bf16 %v1841_v58, %v1839_v56  ;;  %1862 = vpow2.f32 %v1468_v51 }
 0x29b   : > { %v1845_v62 = vpop.eup %1844  ;;  %1864 = vpow2.f32 %v1469_v54  ;;  %v927_v63 = vpop.f32.mrb[24].mxu1 }
 0x29c   : > { %v1847_v0 = vpop.eup %1846  ;;  %1238 = vst [vmem:[%s2374_s27 + $0x20] sm:$0xff] %v1514_v61  ;;  %v1515_v1 = vpack.c.bf16 %v1845_v62, %v1843_v60  ;;  %1866 = vpow2.f32 %v1470_v57  ;;  %v928_v4 = vadd.f32 %v927_v63, %v2352_v2  ;;  %v929_v5 = vpop.f32.mrb[25].mxu1 }
 0x29d   : > { %v1849_v48 = vpop.eup %1848  ;;  %v1058_v6 = vadd.f32 1.0, %v1847_v0  ;;  %1868 = vpow2.f32 %v1471_v59  ;;  %v930_v7 = vadd.f32 %v929_v5, %v2354_v3  ;;  %v931_v8 = vpop.f32.mrb[26].mxu1 }
 0x29e   : > { %v1851_v9 = vpop.eup %1850  ;;  %1239 = vst [vmem:[%s2374_s27 + $0x28] sm:$0xff] %v1515_v1  ;;  %v1059_v10 = vadd.f32 1.0, %v1849_v48  ;;  %v932_v11 = vadd.f32 %v931_v8, %v2352_v2  ;;  %v933_v12 = vpop.f32.mrb[27].mxu1  ;;  %v1472_v15 = vmul.f32 -1.442695, %v928_v4 }
 0x29f   : > { %v1853_v13 = vpop.eup %1852  ;;  %1870 = vrcp.f32 %v1058_v6  ;;  %v1060_v14 = vadd.f32 1.0, %v1851_v9  ;;  %v934_v16 = vadd.f32 %v933_v12, %v2354_v3  ;;  %v1473_v19 = vmul.f32 -1.442695, %v930_v7 }
 0x2a0   : > { %v1855_v17 = vpop.eup %1854  ;;  %1872 = vrcp.f32 %v1059_v10  ;;  %v1061_v18 = vadd.f32 1.0, %v1853_v13  ;;  %v1474_v21 = vmul.f32 -1.442695, %v932_v11 }
 0x2a1   : > { %v1857_v20 = vpop.eup %1856  ;;  %1874 = vrcp.f32 %v1060_v14  ;;  %v1475_v24 = vmul.f32 -1.442695, %v934_v16 }
 0x2a2   : > { %v1859_v22 = vpop.eup %1858  ;;  %v1516_v23 = vpack.c.bf16 %v1857_v20, %v1855_v17  ;;  %1876 = vrcp.f32 %v1061_v18 }
 0x2a3   : > { %v1861_v25 = vpop.eup %1860  ;;  %1878 = vpow2.f32 %v1472_v15  ;;  %v937_v26 = vpop.f32.mrb[28].mxu1 }
 0x2a4   : > { %v1863_v27 = vpop.eup %1862  ;;  %1240 = vst [vmem:[%s2374_s27 + $0x30] sm:$0xff] %v1516_v23  ;;  %v1517_v28 = vpack.c.bf16 %v1861_v25, %v1859_v22  ;;  %1880 = vpow2.f32 %v1473_v19  ;;  %v938_v29 = vadd.f32 %v937_v26, %v2352_v2  ;;  %v939_v30 = vpop.f32.mrb[29].mxu1 }
 0x2a5   : > { %v1865_v31 = vpop.eup %1864  ;;  %v1062_v32 = vadd.f32 1.0, %v1863_v27  ;;  %1882 = vpow2.f32 %v1474_v21  ;;  %v940_v33 = vadd.f32 %v939_v30, %v2354_v3  ;;  %v941_v34 = vpop.f32.mrb[30].mxu1 }
 0x2a6   : > { %v1867_v35 = vpop.eup %1866  ;;  %1241 = vst [vmem:[%s2374_s27 + $0x38] sm:$0xff] %v1517_v28  ;;  %v1063_v36 = vadd.f32 1.0, %v1865_v31  ;;  %1884 = vpow2.f32 %v1475_v24  ;;  %v942_v37 = vadd.f32 %v941_v34, %v2352_v2  ;;  %v943_v38 = vpop.f32.mrb[31].mxu1  ;;  %v1476_v41 = vmul.f32 -1.442695, %v938_v29 }
 0x2a7   : > { %v1869_v39 = vpop.eup %1868  ;;  %1886 = vrcp.f32 %v1062_v32  ;;  %v1064_v40 = vadd.f32 1.0, %v1867_v35  ;;  %v944_v42 = vadd.f32 %v943_v38, %v2354_v3  ;;  %v1477_v44 = vmul.f32 -1.442695, %v940_v33 }
 0x2a8   : > { %1888 = vrcp.f32 %v1063_v36  ;;  %v1065_v43 = vadd.f32 1.0, %v1869_v39  ;;  %v1478_v46 = vmul.f32 -1.442695, %v942_v37 }
 0x2a9   : > { %v1871_v45 = vpop.eup %1870  ;;  %1890 = vrcp.f32 %v1064_v40  ;;  %v1479_v49 = vmul.f32 -1.442695, %v944_v42 }
 0x2aa   : > { %v1873_v47 = vpop.eup %1872  ;;  %1892 = vrcp.f32 %v1065_v43 }
 0x2ab   : > { %v1875_v51 = vpop.eup %1874  ;;  %v1518_v2 = vpack.c.bf16 %v1873_v47, %v1871_v45  ;;  %1894 = vpow2.f32 %v1476_v41 }
 0x2ac   : > { %v1877_v50 = vpop.eup %1876  ;;  %1896 = vpow2.f32 %v1477_v44 }
 0x2ad   : > { %v1879_v52 = vpop.eup %1878  ;;  %1242 = vst [vmem:[%s2374_s27 + $0x40] sm:$0xff] %v1518_v2  ;;  %v1519_v53 = vpack.c.bf16 %v1877_v50, %v1875_v51  ;;  %1898 = vpow2.f32 %v1478_v46 }
 0x2ae   : > { %v1881_v3 = vpop.eup %1880  ;;  %v1066_v54 = vadd.f32 1.0, %v1879_v52  ;;  %1900 = vpow2.f32 %v1479_v49 }
 0x2af   : > { %v1883_v55 = vpop.eup %1882  ;;  %1243 = vst [vmem:[%s2374_s27 + $0x48] sm:$0xff] %v1519_v53  ;;  %v1067_v56 = vadd.f32 1.0, %v1881_v3 }
 0x2b0   : > { %v1885_v57 = vpop.eup %1884  ;;  %1902 = vrcp.f32 %v1066_v54  ;;  %v1068_v58 = vadd.f32 1.0, %v1883_v55 }
 0x2b1   : > { %v1887_v59 = vpop.eup %1886  ;;  %1904 = vrcp.f32 %v1067_v56  ;;  %v1069_v60 = vadd.f32 1.0, %v1885_v57 }
 0x2b2   : > { %v1889_v61 = vpop.eup %1888  ;;  %1906 = vrcp.f32 %v1068_v58 }
 0x2b3   : > { %v1891_v62 = vpop.eup %1890  ;;  %v1520_v63 = vpack.c.bf16 %v1889_v61, %v1887_v59  ;;  %1908 = vrcp.f32 %v1069_v60 }
 0x2b4   : > { %v1893_v0 = vpop.eup %1892 }
 0x2b5   : > { %v1895_v1 = vpop.eup %1894  ;;  %1244 = vst [vmem:[%s2374_s27 + $0x50] sm:$0xff] %v1520_v63  ;;  %v1521_v4 = vpack.c.bf16 %v1893_v0, %v1891_v62 }
 0x2b6   : > { %v1897_v5 = vpop.eup %1896  ;;  %v1070_v48 = vadd.f32 1.0, %v1895_v1 }
 0x2b7   : > { %v1899_v6 = vpop.eup %1898  ;;  %1245 = vst [vmem:[%s2374_s27 + $0x58] sm:$0xff] %v1521_v4  ;;  %v1071_v7 = vadd.f32 1.0, %v1897_v5 }
 0x2b8   : > { %v1901_v8 = vpop.eup %1900  ;;  %1910 = vrcp.f32 %v1070_v48  ;;  %v1072_v9 = vadd.f32 1.0, %v1899_v6 }
 0x2b9   : > { %1912 = vrcp.f32 %v1071_v7  ;;  %v1073_v10 = vadd.f32 1.0, %v1901_v8 }
 0x2ba   : > { %v1903_v11 = vpop.eup %1902  ;;  %1914 = vrcp.f32 %v1072_v9 }
 0x2bb   : > { %v1905_v12 = vpop.eup %1904  ;;  %1916 = vrcp.f32 %v1073_v10 }
 0x2bc   : > { %v1907_v13 = vpop.eup %1906  ;;  %v1522_v14 = vpack.c.bf16 %v1905_v12, %v1903_v11 }
 0x2bd   : > { %v1909_v15 = vpop.eup %1908 }
 0x2be   : > { %1246 = vst [vmem:[%s2374_s27 + $0x60] sm:$0xff] %v1522_v14  ;;  %v1523_v16 = vpack.c.bf16 %v1909_v15, %v1907_v13 }
 0x2c0   : > { %1247 = vst [vmem:[%s2374_s27 + $0x68] sm:$0xff] %v1523_v16 }
 0x2c2   : > { %v1911_v17 = vpop.eup %1910  ;;  %1257 = sbr.rel (!%p2492_p9) target bundleno = 741 (0x2e5), region = 56 }
 0x2c3   : > { %v1913_v18 = vpop.eup %1912 }
 0x2c4   : > { %v1915_v19 = vpop.eup %1914  ;;  %v1524_v20 = vpack.c.bf16 %v1913_v18, %v1911_v17 }
 0x2c5   : > { %v1917_v21 = vpop.eup %1916 }
 0x2c6   : > { %1248 = vst [vmem:[%s2374_s27 + $0x70] sm:$0xff] %v1524_v20  ;;  %v1525_v22 = vpack.c.bf16 %v1917_v21, %v1915_v19 }
 0x2c8   : > { %1249 = vst [vmem:[%s2374_s27 + $0x78] sm:$0xff] %v1525_v22 }
 0x2c9   : > { %s2502_s12 = smov (!%p1260_p10, %s1259_s12), 16 }
 0x2ca   : > { %s2412_s25 = sshll.u32 %s2502_s12, 7 }
 0x2cb   : > { %s1265_s28 = ssub.s32 2048, %s2412_s25 }
 0x2cc   : > { %1266 = vsyncadd %s1251_s8, %s1265_s28  ;;  %p1500_p1 = scmp.ne.s32.totalorder %s2412_s25, 0  ;;  %s1528_s30 = sshll.u32 %s2138_s22, 11 }
 0x2cd   : > { %s2422_s11 = scalar_lea.hbm %s2476_s5, %s1528_s30  ;;  %s1272_s14 = sshll.u32 %s2374_s27, 4  ;;  %s2425_s14 = int_to_ptr.vmem [resolvable:$true] %s1272_s14 }
 0x2ce   : > { %s2002_s15 = scalar_lea.vmem %s2425_s14, %s2412_s25  ;;  %s2084_s16 = smov [#allocation8]  }
 0x2cf   : > { %p2003_p3 = scmp.ne.s32.totalorder %s2425_s14, %s2002_s15  ;;  %s2006_s29 = sshll.u32 %s2084_s16, 4  ;;  %s2007_s29 = int_to_ptr.vmem [resolvable:$false] %s2006_s29 }
 0x2d0   : > { %s2008_s22 = scalar_lea.vmem %s2007_s29, 4096  ;;  %p2009_p11 = scmp.lt.s32.totalorder %s2425_s14, %s2007_s29 }
 0x2d1   : > { %p2004_p5 = pnand %p2003_p3, %p1500_p1  ;;  %p2010_p13 = scmp.lt.s32.totalorder %s2008_s22, %s2002_s15 }
 0x2d3   : > { %p2005_p6 = pneg %p2004_p5  ;;  %p2011_p0 = por %p2010_p13, %p2009_p11 }
 0x2d5   : > { %p2012_p12 = pnand %p2011_p0, %p2005_p6 }
 0x2d7   : > { %2015 = shalt.err (!%p2012_p12)
}
 0x2d8   : > { %s2016_s7 = scalar_lea.hbm %s2422_s11, %s2412_s25  ;;  %s2020_s27 = scalar_lea.hbm %s2476_s5, 3200 }
 0x2d9   : > { %p2017_p7 = scmp.ne.s32.totalorder %s2422_s11, %s2016_s7  ;;  %p2021_p9 = scmp.lt.u32.totalorder %s2422_s11, %s2476_s5 }
 0x2da   : > { %p2022_p10 = scmp.lt.u32.totalorder %s2020_s27, %s2016_s7  ;;  %p2024_p5 = scmp.lt.u32.totalorder %s2016_s7, %s2422_s11 }
 0x2db   : > { %p2018_p2 = pnand %p2017_p7, %p1500_p1 }
 0x2dc   : > { %p2023_p3 = por %p2022_p10, %p2021_p9 }
 0x2dd   : > { %p2019_p8 = pneg %p2018_p2 }
 0x2de   : > { %p2025_p6 = por %p2024_p5, %p2023_p3 }
 0x2e0   : > { %p2026_p11 = pnand %p2025_p6, %p2019_p8 }
 0x2e2   : > { %2029 = shalt.err (!%p2026_p11)
}
 0x2e3   : > { %s2085_s28 = smov 128   ;;  %s2086_s30 = smov 8  }
 0x2e4   : > { %1278 = dma.vmem_to_hbm [thread:$0]  (%p1500_p1), %s2425_s14, %s2412_s25, %s2422_s11, %s1251_s8, %s2085_s28, %s2085_s28, %s2086_s30  }
 0x2e5 PF: > { %s1287_s26 = sand.u32 1, %s2060_s18   ;;  %p2493_p13 = scmp.ne.s32.totalorder %s2484_s6, 0 }
 0x2e6   : > { %s1288_s9 = scalar_lea.sflag [#allocation4], %s1287_s26 }
 0x2e7   : > { %p1611_p0 = pnand %p1368_p4, %p2493_p13 }
 0x2e9   : > { %2055 = dma.done.wait (!%p1611_p0), %s1288_s9, 2048  }
 0x2ea   : > { %2057 = vsyncadd (!%p1611_p0), %s1288_s9, 4294965248  ;;  %s2494_s15 = sld [smem:[#allocation12_spill]]  ;;  %p19_p12 = scmp.ge.s32.totalorder %s2142_s24, 4  }
 0x2eb   : > { %s2495_s18 = smov %s2064_s19  ;;  %s2496_s19 = smov %s2068_s20 }
 0x2ec   : > { %s2498_s21 = smov %s2142_s24  ;;  %21 = sbr.rel (!%p19_p12) target bundleno = 6 (0x6), region = 93 }
 0x2f0   : > { %s2497_s20 = smov %s2494_s15 }
 0x2f3   :  { %1293 = vsyncpa [#allocation3], 1 }
 0x2f4   :  { %1295 = vsyncpa [#allocation3 + $0x1], 1 }
 0x2f5   :  { %1296 = vsyncpa [#allocation6], 1 }
 0x2f6   :  { %1297 = vsyncpa [#allocation4], 1 }
 0x2f7   :  { %1299 = vsyncpa [#allocation4 + $0x1], 1 }

</bundles_post_ra>
